<compile_context>
chip_gen: v7x
topology: tpu7x:2x2x1
jax: 0.10.0
libtpu: 0.0.40
codegen_flags: <defaults>
</compile_context>

<pallas_src>
import jax
import jax.numpy as jnp
from jax.experimental import pallas as pl
from jax.experimental.pallas import tpu as pltpu

IN_FEATURES = 28 * 28   # 784
OUT_FEATURES = 10
TILE_B = 2048           # f32 x tile ~6.1 MiB -> ~12.3 MiB double-buffered


def linear_relu_kernel(x_ref, w_ref, b_ref, o_ref):
    # x_ref: (tile_b, 784) f32, w_ref: (784, 10) f32, b_ref: (1, 10) f32,
    # o_ref: (tile_b, 10) f32.  K=784 is fully inside the block, so garbage in
    # masked tail rows only affects rows whose stores are dropped anyway.
    y = jnp.dot(x_ref[...], w_ref[...], preferred_element_type=jnp.float32)
    y = y + b_ref[...]                       # bias broadcast over batch rows
    o_ref[...] = jnp.maximum(y, 0.0).astype(o_ref.dtype)


def dnn_forward(x, w, b):
    """Equivalent of Dnn.forward: relu(Linear(784, 10)(x.view(B, -1)))."""
    batch = x.shape[0]
    x_flat = x.reshape(batch, -1)            # contiguous flatten, no copy/cast
    w_f32 = w.astype(jnp.float32)
    b2d = b.reshape(1, OUT_FEATURES).astype(jnp.float32)

    # Batch tile: at most TILE_B, rounded up to 8 sublanes; no HBM padding —
    # the (possibly partial) last block is masked by Pallas.
    tile_b = min(TILE_B, max(8, ((batch + 7) // 8) * 8))
    grid = (pl.cdiv(batch, tile_b),)

    x_bytes = jnp.dtype(x_flat.dtype).itemsize
    cost = pl.CostEstimate(
        flops=2 * batch * IN_FEATURES * OUT_FEATURES,
        transcendentals=0,
        bytes_accessed=(batch * IN_FEATURES * x_bytes        # x read
                        + batch * OUT_FEATURES * 4            # out write
                        + IN_FEATURES * OUT_FEATURES * 4      # W
                        + OUT_FEATURES * 4),                  # b
    )

    out = pl.pallas_call(
        linear_relu_kernel,
        out_shape=jax.ShapeDtypeStruct((batch, OUT_FEATURES), jnp.float32),
        grid_spec=pltpu.PrefetchScalarGridSpec(
            num_scalar_prefetch=0,
            grid=grid,
            in_specs=[
                pl.BlockSpec((tile_b, IN_FEATURES), lambda i: (i, 0)),
                pl.BlockSpec((IN_FEATURES, OUT_FEATURES), lambda i: (0, 0)),
                pl.BlockSpec((1, OUT_FEATURES), lambda i: (0, 0)),
            ],
            out_specs=pl.BlockSpec((tile_b, OUT_FEATURES), lambda i: (i, 0)),
        ),
        compiler_params=pltpu.CompilerParams(
            dimension_semantics=("parallel",),
        ),
        cost_estimate=cost,
    )(x_flat, w_f32, b2d)
    return out


if __name__ == "__main__":
    key = jax.random.PRNGKey(0)
    kx, kw, kb = jax.random.split(key, 3)

    # Small deterministic example consistent with the module:
    # batch=2, single channel, 28x28 image (NCHW like PyTorch MNIST).
    x = jax.random.normal(kx, (2, 1, 28, 28), dtype=jnp.float32)

    # Deterministic params (nn.Linear(784, 10): W (10, 784), b (10,)) stored
    # transposed as (784, 10) so the kernel computes x @ W directly.
    bound = 1.0 / (IN_FEATURES ** 0.5)
    w = jax.random.uniform(kw, (IN_FEATURES, OUT_FEATURES),
                           minval=-bound, maxval=bound, dtype=jnp.float32)
    b = jax.random.uniform(kb, (OUT_FEATURES,),
                           minval=-bound, maxval=bound, dtype=jnp.float32)

    out = dnn_forward(x, w, b)
    jax.block_until_ready(out)

    # Pure-JAX f32 reference (matches the PyTorch module's math).
    ref = jnp.maximum(x.reshape(x.shape[0], -1) @ w + b, 0.0)

    assert out.shape == (2, OUT_FEATURES)
    assert jnp.allclose(out, ref, atol=1e-4, rtol=1e-4)

    print("KERNEL_OK")
</pallas_src>

<mosaic_0001>
module attributes {stable_mosaic.version = 11 : i64} {
  func.func @linear_relu_kernel(%arg0: i32, %arg1: memref<8x784xf32, #tpu.memory_space<vmem>>, %arg2: memref<784x10xf32, #tpu.memory_space<vmem>>, %arg3: memref<1x10xf32, #tpu.memory_space<vmem>>, %arg4: memref<8x10xf32, #tpu.memory_space<vmem>>) attributes {dimension_semantics = [#tpu.dimension_semantics<parallel>], iteration_bounds = array<i64: 1>, scalar_prefetch = 0 : i64, scratch_operands = 0 : i64, tpu.core_type = #tpu.core_type<tc>, window_params = [{transform_indices = @transform_0, window_bounds = array<i64: 8, 784>}, {pipeline_mode = #tpu.pipeline_mode<synchronous>, transform_indices = @transform_1, window_bounds = array<i64: 784, 10>}, {pipeline_mode = #tpu.pipeline_mode<synchronous>, transform_indices = @transform_2, window_bounds = array<i64: 1, 10>}, {transform_indices = @transform_3, window_bounds = array<i64: 8, 10>}]} {
    %c0 = arith.constant 0 : index
    %c0_0 = arith.constant 0 : index
    %0 = vector.load %arg1[%c0, %c0_0] : memref<8x784xf32, #tpu.memory_space<vmem>>, vector<8x784xf32>
    %c0_1 = arith.constant 0 : index
    %c0_2 = arith.constant 0 : index
    %1 = vector.load %arg2[%c0_1, %c0_2] : memref<784x10xf32, #tpu.memory_space<vmem>>, vector<784x10xf32>
    %cst = arith.constant dense<0.000000e+00> : vector<8x10xf32>
    %2 = tpu.matmul %0, %1, %cst {dimension_numbers = #tpu.dot_dimension_numbers<[1], [0], [0], [1], [0, 0, 1, 1], [], []>} : vector<8x784xf32>, vector<784x10xf32>, vector<8x10xf32> -> vector<8x10xf32>
    %c0_3 = arith.constant 0 : index
    %c0_4 = arith.constant 0 : index
    %3 = vector.load %arg3[%c0_3, %c0_4] : memref<1x10xf32, #tpu.memory_space<vmem>>, vector<1x10xf32>
    %4 = vector.broadcast %3 : vector<1x10xf32> to vector<8x10xf32>
    %5 = arith.addf %2, %4 : vector<8x10xf32>
    %cst_5 = arith.constant 0.000000e+00 : f32
    %6 = vector.broadcast %cst_5 : f32 to vector<8x10xf32>
    %7 = arith.maximumf %5, %6 : vector<8x10xf32>
    %c0_6 = arith.constant 0 : index
    %c0_7 = arith.constant 0 : index
    %8 = vector.load %arg4[%c0_6, %c0_7] : memref<8x10xf32, #tpu.memory_space<vmem>>, vector<8x10xf32>
    tpu.vector_store %arg4[%c0_6, %c0_7], %7 {strides = array<i32>} : memref<8x10xf32, #tpu.memory_space<vmem>>, vector<8x10xf32>,
    return
  }
  func.func @transform_0(%arg0: i32) -> (i32, i32) {
    %c0_i32 = arith.constant 0 : i32
    %c0_i32_0 = arith.constant 0 : i32
    return %arg0, %c0_i32 : i32, i32
  }
  func.func @transform_1(%arg0: i32) -> (i32, i32) {
    %c0_i32 = arith.constant 0 : i32
    %c0_i32_0 = arith.constant 0 : i32
    %c0_i32_1 = arith.constant 0 : i32
    return %c0_i32, %c0_i32_0 : i32, i32
  }
  func.func @transform_2(%arg0: i32) -> (i32, i32) {
    %c0_i32 = arith.constant 0 : i32
    %c0_i32_0 = arith.constant 0 : i32
    %c0_i32_1 = arith.constant 0 : i32
    return %c0_i32, %c0_i32_0 : i32, i32
  }
  func.func @transform_3(%arg0: i32) -> (i32, i32) {
    %c0_i32 = arith.constant 0 : i32
    %c0_i32_0 = arith.constant 0 : i32
    return %arg0, %c0_i32 : i32, i32
  }
}

</mosaic_0001>

<bundles_post_ra>
// kernel: tpu_custom_call.1
= control target key start
LH: loop header
LB: loop body
LE: loop exit
PB: predicated region body
PF: predicated region fallthrough
CT: control target
= control target key end

     0   :  { %8 = vsyncpa [#allocation3], 0  ;;  %v774_v51 = vmov 1983009808   ;;  %v143_v53 = vlaneseq  ;;  %vm776_vm0 = vmmov 0   ;;  %vm213_vm1 = vcmask 130048   ;;  %s1144_s0 = inlined_call_operand.vmem [shape: f32[2,784], index: 0, kind: input, shape index: {}]   ;;  %s1145_s1 = inlined_call_operand.vmem [shape: f32[784,10], index: 1, kind: input, shape index: {}]   ;;  %s1146_s2 = inlined_call_operand.vmem [shape: f32[1,10], index: 2, kind: input, shape index: {}]   ;;  %s1147_s3 = inlined_call_operand.hbm [shape: f32[2,10], index: 3, kind: output, shape index: {}]  }
   0x1   :  { %v39_v0 = vld [vmem:[%s1145_s1 + $0x80] sm:$0xff]  ;;  %v40_v1 = vld [vmem:[%s1145_s1 + $0x88] sm:$0xff]  ;;  %v41_v12 = vld [vmem:[%s1145_s1 + $0x90] sm:$0xff]  ;;  %v141_v52 = vunpack.c.l.s4 %v774_v51  ;;  %vm497_vm2 = vcmask 80896  }
   0x2   :  { %v632_v2 = vpack.c.bf16 %v40_v1, %v39_v0  ;;  %v23_v3 = vld [vmem:[%s1145_s1] sm:$0xff]  ;;  %v24_v4 = vld [vmem:[%s1145_s1 + $0x8] sm:$0xff]  ;;  %v42_v13 = vld [vmem:[%s1145_s1 + $0x98] sm:$0xff] }
   0x3   :  { %v71_v5 = vld [vmem:[%s1145_s1 + $0x180] sm:$0xff]  ;;  %v634_v6 = vpack.c.bf16 %v24_v4, %v23_v3  ;;  %v72_v7 = vld [vmem:[%s1145_s1 + $0x188] sm:$0xff]  ;;  %v25_v14 = vld [vmem:[%s1145_s1 + $0x10] sm:$0xff]  ;;  %v636_v15 = vpack.c.bf16 %v42_v13, %v41_v12  ;;  %v144_v3 = vshrl.u32 %v143_v53, 7 }
   0x4   :  { %v55_v8 = vld [vmem:[%s1145_s1 + $0x100] sm:$0xff]  ;;  %v56_v9 = vld [vmem:[%s1145_s1 + $0x108] sm:$0xff]  ;;  %633 = vmatprep.subr.bf16.mxu0 %v632_v2  ;;  %v664_v10 = vpack.c.bf16 %v72_v7, %v71_v5  ;;  %v26_v16 = vld [vmem:[%s1145_s1 + $0x18] sm:$0xff]  ;;  %v142_v2 = vunpack.c.0.s8 %v141_v52 }
   0x5   :  { %v666_v11 = vpack.c.bf16 %v56_v9, %v55_v8  ;;  %635 = vmatpush3.bf16.msra.mxu0 %v634_v6  ;;  %v73_v17 = vld [vmem:[%s1145_s1 + $0x190] sm:$0xff]  ;;  %v74_v18 = vld [vmem:[%s1145_s1 + $0x198] sm:$0xff]  ;;  %v638_v19 = vpack.c.bf16 %v26_v16, %v25_v14  ;;  %v43_v23 = vld [vmem:[%s1145_s1 + $0xa0] sm:$0xff] }
   0x6   :  { %665 = vmatprep.subr.bf16.mxu1 %v664_v10  ;;  %v668_v20 = vpack.c.bf16 %v74_v18, %v73_v17  ;;  %v57_v21 = vld [vmem:[%s1145_s1 + $0x110] sm:$0xff]  ;;  %v58_v22 = vld [vmem:[%s1145_s1 + $0x118] sm:$0xff]  ;;  %637 = vmatprep.subr.bf16.mxu0 %v636_v15  ;;  %v44_v25 = vld [vmem:[%s1145_s1 + $0xa8] sm:$0xff] }
   0x7   :  { %667 = vmatpush3.bf16.msra.mxu1 %v666_v11  ;;  %v670_v24 = vpack.c.bf16 %v58_v22, %v57_v21  ;;  %v27_v26 = vld [vmem:[%s1145_s1 + $0x20] sm:$0xff]  ;;  %v28_v27 = vld [vmem:[%s1145_s1 + $0x28] sm:$0xff]  ;;  %v640_v28 = vpack.c.bf16 %v44_v25, %v43_v23  ;;  %v45_v35 = vld [vmem:[%s1145_s1 + $0xb0] sm:$0xff] }
   0x8   :  { %669 = vmatprep.subr.bf16.mxu1 %v668_v20  ;;  %v75_v29 = vld [vmem:[%s1145_s1 + $0x1a0] sm:$0xff]  ;;  %v76_v30 = vld [vmem:[%s1145_s1 + $0x1a8] sm:$0xff]  ;;  %v642_v32 = vpack.c.bf16 %v28_v27, %v27_v26  ;;  %v46_v36 = vld [vmem:[%s1145_s1 + $0xb8] sm:$0xff]  ;;  %v969_v20 = vsub.s32 %v142_v2, %v144_v3 }
   0x9   :  { %v59_v31 = vld [vmem:[%s1145_s1 + $0x120] sm:$0xff]  ;;  %639 = vmatpush3.bf16.msra.mxu0 %v638_v19  ;;  %v672_v33 = vpack.c.bf16 %v76_v30, %v75_v29  ;;  %v60_v34 = vld [vmem:[%s1145_s1 + $0x128] sm:$0xff]  ;;  %v644_v37 = vpack.c.bf16 %v46_v36, %v45_v35  ;;  %v29_v38 = vld [vmem:[%s1145_s1 + $0x30] sm:$0xff] }
   0xa   :  { %641 = vmatprep.subr.bf16.mxu0 %v640_v28  ;;  %v30_v39 = vld [vmem:[%s1145_s1 + $0x38] sm:$0xff]  ;;  %v77_v40 = vld [vmem:[%s1145_s1 + $0x1b0] sm:$0xff]  ;;  %v674_v41 = vpack.c.bf16 %v60_v34, %v59_v31  ;;  %v47_v46 = vld [vmem:[%s1145_s1 + $0xc0] sm:$0xff] }
   0xb   :  { %671 = vmatpush3.bf16.msra.mxu1 %v670_v24  ;;  %v78_v42 = vld [vmem:[%s1145_s1 + $0x1b8] sm:$0xff]  ;;  %v61_v43 = vld [vmem:[%s1145_s1 + $0x130] sm:$0xff]  ;;  %v48_v47 = vld [vmem:[%s1145_s1 + $0xc8] sm:$0xff]  ;;  %v646_v48 = vpack.c.bf16 %v30_v39, %v29_v38 }
   0xc   :  { %673 = vmatprep.subr.bf16.mxu1 %v672_v33  ;;  %v676_v44 = vpack.c.bf16 %v78_v42, %v77_v40  ;;  %v62_v45 = vld [vmem:[%s1145_s1 + $0x138] sm:$0xff]  ;;  %v79_v49 = vld [vmem:[%s1145_s1 + $0x1c0] sm:$0xff]  ;;  %v80_v50 = vld [vmem:[%s1145_s1 + $0x1c8] sm:$0xff]  ;;  %v648_v54 = vpack.c.bf16 %v48_v47, %v47_v46 }
   0xd   :  { %643 = vmatpush3.bf16.msra.mxu0 %v642_v32  ;;  %v31_v55 = vld [vmem:[%s1145_s1 + $0x40] sm:$0xff]  ;;  %v32_v56 = vld [vmem:[%s1145_s1 + $0x48] sm:$0xff]  ;;  %v678_v57 = vpack.c.bf16 %v62_v45, %v61_v43  ;;  %v49_v58 = vld [vmem:[%s1145_s1 + $0xd0] sm:$0xff]  ;;  %v680_v60 = vpack.c.bf16 %v80_v50, %v79_v49 }
   0xe   :  { %645 = vmatprep.subr.bf16.mxu0 %v644_v37  ;;  %v50_v59 = vld [vmem:[%s1145_s1 + $0xd8] sm:$0xff]  ;;  %v63_v61 = vld [vmem:[%s1145_s1 + $0x140] sm:$0xff]  ;;  %v64_v62 = vld [vmem:[%s1145_s1 + $0x148] sm:$0xff]  ;;  %v650_v63 = vpack.c.bf16 %v32_v56, %v31_v55 }
   0xf   :  { %675 = vmatpush3.bf16.msra.mxu1 %v674_v41  ;;  %v81_v0 = vld [vmem:[%s1145_s1 + $0x1d0] sm:$0xff]  ;;  %v82_v1 = vld [vmem:[%s1145_s1 + $0x1d8] sm:$0xff]  ;;  %v652_v4 = vpack.c.bf16 %v50_v59, %v49_v58  ;;  %v682_v8 = vpack.c.bf16 %v64_v62, %v63_v61  ;;  %v51_v10 = vld [vmem:[%s1145_s1 + $0xe0] sm:$0xff] }
  0x10   :  { %677 = vmatprep.subr.bf16.mxu1 %v676_v44  ;;  %v33_v5 = vld [vmem:[%s1145_s1 + $0x50] sm:$0xff]  ;;  %v34_v6 = vld [vmem:[%s1145_s1 + $0x58] sm:$0xff]  ;;  %v52_v11 = vld [vmem:[%s1145_s1 + $0xe8] sm:$0xff]  ;;  %v684_v12 = vpack.c.bf16 %v82_v1, %v81_v0  ;;  %v775_v1 = vmov 0.0|0.0  }
  0x11   :  { %647 = vmatpush3.bf16.msra.mxu0 %v646_v48  ;;  %v65_v7 = vld [vmem:[%s1145_s1 + $0x150] sm:$0xff]  ;;  %v66_v9 = vld [vmem:[%s1145_s1 + $0x158] sm:$0xff]  ;;  %v35_v13 = vld [vmem:[%s1145_s1 + $0x60] sm:$0xff]  ;;  %v654_v16 = vpack.c.bf16 %v34_v6, %v33_v5  ;;  %v656_v21 = vpack.c.bf16 %v52_v11, %v51_v10 }
  0x12   :  { %649 = vmatprep.subr.bf16.mxu0 %v648_v54  ;;  %v36_v14 = vld [vmem:[%s1145_s1 + $0x68] sm:$0xff]  ;;  %v83_v15 = vld [vmem:[%s1145_s1 + $0x1e0] sm:$0xff]  ;;  %v53_v18 = vld [vmem:[%s1145_s1 + $0xf0] sm:$0xff]  ;;  %v686_v22 = vpack.c.bf16 %v66_v9, %v65_v7 }
  0x13   :  { %679 = vmatpush3.bf16.msra.mxu1 %v678_v57  ;;  %v84_v17 = vld [vmem:[%s1145_s1 + $0x1e8] sm:$0xff]  ;;  %v54_v19 = vld [vmem:[%s1145_s1 + $0xf8] sm:$0xff]  ;;  %v67_v26 = vld [vmem:[%s1145_s1 + $0x160] sm:$0xff]  ;;  %v658_v29 = vpack.c.bf16 %v36_v14, %v35_v13  ;;  %v777_v14 = vmov 0.0  }
  0x14   :  { %681 = vmatprep.subr.bf16.mxu1 %v680_v60  ;;  %v738_v23 = vld [vmem:[%s1144_s0] ss:$14 sps:$4 sm:$0xff]   ;;  %v740_v24 = vld [vmem:[%s1144_s0 + $0x1c] ss:$14 sps:$4 sm:$0xff]   ;;  %v688_v25 = vpack.c.bf16 %v84_v17, %v83_v15  ;;  %v742_v33 = vld [vmem:[%s1144_s0 + $0x4] ss:$14 sps:$4 sm:$0xff]   ;;  %v660_v35 = vpack.c.bf16 %v54_v19, %v53_v18 }
  0x15   :  { %651 = vmatpush3.bf16.msra.mxu0 %v650_v63  ;;  %v68_v27 = vld [vmem:[%s1145_s1 + $0x168] sm:$0xff]  ;;  %v85_v28 = vld [vmem:[%s1145_s1 + $0x1f0] sm:$0xff]  ;;  %v86_v30 = vld [vmem:[%s1145_s1 + $0x1f8] sm:$0xff]  ;;  %v146_v31 = vrot.slane %v738_v23, %v969_v20  ;;  %v160_v32 = vrot.slane %v740_v24, %v969_v20  ;;  %v153_v42 = vrot.slane %v742_v33, %v969_v20 }
  0x16   :  { %653 = vmatprep.subr.bf16.mxu0 %v652_v4  ;;  %v743_v34 = vld [vmem:[%s1144_s0 + $0x20] ss:$14 sps:$4 sm:$0xff]   ;;  %v38_v37 = vld [vmem:[%s1145_s1 + $0x78] sm:$0xff]  ;;  %v690_v38 = vpack.c.bf16 %v68_v27, %v67_v26  ;;  %v692_v44 = vpack.c.bf16 %v86_v30, %v85_v28  ;;  %v747_v5 = vld [vmem:[%s1144_s0 + $0x24] ss:$14 sps:$4 sm:$0xff]  }
  0x17   :  { %683 = vmatpush3.bf16.msra.mxu1 %v682_v8  ;;  %v37_v36 = vld [vmem:[%s1145_s1 + $0x70] sm:$0xff]  ;;  %v169_v39 = vcombine.high %v146_v31, %v160_v32  ;;  %v103_v40 = vld [vmem:[%s1145_s1 + $0x280] sm:$0xff]  ;;  %v104_v41 = vld [vmem:[%s1145_s1 + $0x288] sm:$0xff]  ;;  %v167_v43 = vrot.slane %v743_v34, %v969_v20  ;;  %v168_v55 = vcombine.low %v146_v31, %v160_v32  ;;  %v196_v11 = vrot.slane %v747_v5, %v969_v20 }
  0x18   :  { %685 = vmatprep.subr.bf16.mxu1 %v684_v12  ;;  %v69_v45 = vld [vmem:[%s1145_s1 + $0x170] sm:$0xff]  ;;  %v70_v46 = vld [vmem:[%s1145_s1 + $0x178] sm:$0xff]  ;;  %v662_v47 = vpack.c.bf16 %v38_v37, %v37_v36  ;;  %v696_v49 = vpack.c.bf16 %v104_v41, %v103_v40  ;;  %v87_v50 = vld [vmem:[%s1145_s1 + $0x200] sm:$0xff] }
  0x19   :  { %655 = vmatpush3.bf16.msra.mxu0 %v654_v16  ;;  %280 = vmatprep.mubr.f32.mxu0 %v169_v39  ;;  %v171_v48 = vcombine.high %v153_v42, %v167_v43  ;;  %v88_v51 = vld [vmem:[%s1145_s1 + $0x208] sm:$0xff]  ;;  %v694_v52 = vpack.c.bf16 %v70_v46, %v69_v45  ;;  %v105_v53 = vld [vmem:[%s1145_s1 + $0x290] sm:$0xff]  ;;  %v106_v54 = vld [vmem:[%s1145_s1 + $0x298] sm:$0xff]  ;;  %v170_v57 = vcombine.low %v153_v42, %v167_v43 }
  0x1a   :  { %657 = vmatprep.subr.bf16.mxu0 %v656_v21  ;;  %v698_v56 = vpack.c.bf16 %v88_v51, %v87_v50  ;;  %v700_v58 = vpack.c.bf16 %v106_v54, %v105_v53  ;;  %v89_v59 = vld [vmem:[%s1145_s1 + $0x210] sm:$0xff]  ;;  %v90_v60 = vld [vmem:[%s1145_s1 + $0x218] sm:$0xff]  ;;  %v107_v61 = vld [vmem:[%s1145_s1 + $0x2a0] sm:$0xff] }
  0x1b   :  { %687 = vmatpush3.bf16.msra.mxu1 %v686_v22  ;;  %350 = vmatprep.mubr.f32.mxu1 %v171_v48  ;;  %v108_v62 = vld [vmem:[%s1145_s1 + $0x2a8] sm:$0xff]  ;;  %v91_v63 = vld [vmem:[%s1145_s1 + $0x220] sm:$0xff]  ;;  %v702_v2 = vpack.c.bf16 %v90_v60, %v89_v59  ;;  %v109_v3 = vld [vmem:[%s1145_s1 + $0x2b0] sm:$0xff] }
  0x1c   :  { %689 = vmatprep.subr.bf16.mxu1 %v688_v25  ;;  %v92_v0 = vld [vmem:[%s1145_s1 + $0x228] sm:$0xff]  ;;  %v704_v6 = vpack.c.bf16 %v108_v62, %v107_v61  ;;  %v110_v9 = vld [vmem:[%s1145_s1 + $0x2b8] sm:$0xff]  ;;  %v119_v12 = vld [vmem:[%s1145_s1 + $0x300] sm:$0xff] }
  0x1d   :  { %659 = vmatpush3.bf16.msra.mxu0 %v658_v29  ;;  %v744_v4 = vld [vmem:[%s1144_s0 + $0x8] ss:$14 sps:$4 sm:$0xff]   ;;  %v746_v7 = vld [vmem:[%s1144_s0 + $0xc] ss:$14 sps:$4 sm:$0x33]   ;;  %v706_v18 = vpack.c.bf16 %v92_v0, %v91_v63  ;;  %v708_v21 = vpack.c.bf16 %v110_v9, %v109_v3  ;;  %v95_v28 = vld [vmem:[%s1145_s1 + $0x240] sm:$0xff] }
  0x1e   :  { %661 = vmatprep.subr.bf16.mxu0 %v660_v35  ;;  %v749_v8 = vld [vmem:[%s1144_s0 + $0x28] ss:$14 sps:$4 sm:$0x33]   ;;  %v182_v10 = vrot.slane %v744_v4, %v969_v20  ;;  %v189_v15 = vrot.slane %v746_v7, %v969_v20  ;;  %v94_v23 = vld [vmem:[%s1145_s1 + $0x238] sm:$0xff]  ;;  %v115_v36 = vld [vmem:[%s1145_s1 + $0x2e0] sm:$0xff] }
  0x1f   :  { %691 = vmatpush3.bf16.msra.mxu1 %v690_v38  ;;  %v120_v13 = vld [vmem:[%s1145_s1 + $0x308] sm:$0xff]  ;;  %v203_v16 = vrot.slane %v749_v8, %v969_v20  ;;  %v93_v22 = vld [vmem:[%s1145_s1 + $0x230] sm:$0xff]  ;;  %v111_v20 = vld [vmem:[%s1145_s1 + $0x2c0] sm:$0xff] }
  0x20   :  { %693 = vmatprep.subr.bf16.mxu1 %v692_v44  ;;  %v729_v17 = vpack.c.bf16 %v120_v13, %v119_v12  ;;  %v205_v19 = vcombine.high %v182_v10, %v196_v11  ;;  %v112_v25 = vld [vmem:[%s1145_s1 + $0x2c8] sm:$0xff]  ;;  %v710_v26 = vpack.c.bf16 %v94_v23, %v93_v22  ;;  %v113_v30 = vld [vmem:[%s1145_s1 + $0x2d0] sm:$0xff]  ;;  %v114_v31 = vld [vmem:[%s1145_s1 + $0x2d8] sm:$0xff] }
  0x21   :  { %663 = vmatpush3.bf16.msra.mxu0 %v662_v47  ;;  %v206_v24 = vcombine.low %v189_v15, %v203_v16  ;;  %v712_v27 = vpack.c.bf16 %v112_v25, %v111_v20  ;;  %v96_v29 = vld [vmem:[%s1145_s1 + $0x248] sm:$0xff]  ;;  %v716_v33 = vpack.c.bf16 %v114_v31, %v113_v30  ;;  %v97_v34 = vld [vmem:[%s1145_s1 + $0x250] sm:$0xff]  ;;  %v98_v35 = vld [vmem:[%s1145_s1 + $0x258] sm:$0xff] }
  0x22   :  { %697 = vmatprep.subr.bf16.mxu0 %v696_v49  ;;  %v714_v32 = vpack.c.bf16 %v96_v29, %v95_v28  ;;  %v116_v37 = vld [vmem:[%s1145_s1 + $0x2e8] sm:$0xff]  ;;  %v718_v38 = vpack.c.bf16 %v98_v35, %v97_v34  ;;  %v99_v40 = vld [vmem:[%s1145_s1 + $0x260] sm:$0xff]  ;;  %v117_v42 = vld [vmem:[%s1145_s1 + $0x2f0] sm:$0xff]  ;;  %v204_v49 = vcombine.low %v182_v10, %v196_v11 }
  0x23   :  { %695 = vmatpush3.bf16.msra.mxu1 %v694_v52  ;;  %v720_v39 = vpack.c.bf16 %v116_v37, %v115_v36  ;;  %v100_v41 = vld [vmem:[%s1145_s1 + $0x268] sm:$0xff]  ;;  %v118_v43 = vld [vmem:[%s1145_s1 + $0x2f8] sm:$0xff]  ;;  %v101_v46 = vld [vmem:[%s1145_s1 + $0x270] sm:$0xff] }
  0x24   :  { %281 = vmatmul.mubr.f32.vlgmr.msra.gmra.mrb[0].mxu0 %v168_v55  ;;  %728 = vmatprep.subr.bf16.mxu1 %v775_v1  ;;  %v722_v44 = vpack.c.bf16 %v100_v41, %v99_v40  ;;  %v724_v45 = vpack.c.bf16 %v118_v43, %v117_v42  ;;  %v102_v47 = vld [vmem:[%s1145_s1 + $0x278] sm:$0xff]  ;;  %v515_v51 = vld [vmem:[%s1146_s2] ss:$0 sm:$0xff] }
  0x25   :  { %699 = vmatpush3.bf16.msra.mxu0 %v698_v56  ;;  %420 = vmatprep.mubr.f32.mxu0 %v205_v19  ;;  %v726_v48 = vpack.c.bf16 %v102_v47, %v101_v46 }
  0x26   :  { %351 = vmatmul.mubr.f32.vlgmr.msra.gmra.mrb[0].mxu1 %v170_v57  ;;  %701 = vmatprep.subr.bf16.mxu0 %v700_v58 }
  0x27   :  { %629 = vmatprep.mubr.msk.f32.mxu1 %vm776_vm0, %v777_v14  ;;  %730 = vmatpush3.bf16.msra.mxu1 %v729_v17 }
  0x29   :  { %703 = vmatpush3.bf16.msra.mxu0 %v702_v2 }
  0x2a   :  { %705 = vmatprep.subr.bf16.mxu0 %v704_v6  ;;  %630 = vmatmul.mubr.msk.f32.vlgmr.msra.gmra.mrb[2].mxu1 %vm213_vm1, %v206_v24 }
  0x2d   :  { %707 = vmatpush3.bf16.msra.mxu0 %v706_v18 }
  0x2e   :  { %709 = vmatprep.subr.bf16.mxu0 %v708_v21 }
  0x31   :  { %711 = vmatpush3.bf16.msra.mxu0 %v710_v26 }
  0x32   :  { %713 = vmatprep.subr.bf16.mxu0 %v712_v27 }
  0x35   :  { %715 = vmatpush3.bf16.msra.mxu0 %v714_v32 }
  0x36   :  { %717 = vmatprep.subr.bf16.mxu0 %v716_v33 }
  0x39   :  { %719 = vmatpush3.bf16.msra.mxu0 %v718_v38 }
  0x3a   :  { %721 = vmatprep.subr.bf16.mxu0 %v720_v39 }
  0x3d   :  { %723 = vmatpush3.bf16.msra.mxu0 %v722_v44 }
  0x3e   :  { %725 = vmatprep.subr.bf16.mxu0 %v724_v45 }
  0x41   :  { %727 = vmatpush3.bf16.msra.mxu0 %v726_v48 }
  0x44   :  { %421 = vmatmul.mubr.f32.vlgmr.msra.gmra.mrb[2].mxu0 %v204_v49 }
  0xf7   :  { %v549_v50 = vpop.f32.mrb[0].mxu0 }
  0xf8   :  { %v550_v52 = vpop.f32.mrb[1].mxu0 }
  0xf9   :  { %v551_v53 = vadd.f32 %v550_v52, %v549_v50  ;;  %v584_v54 = vpop.f32.mrb[0].mxu1 }
  0xfa   :  { %v585_v55 = vpop.f32.mrb[1].mxu1 }
  0xfb   :  { %v283_v56 = vadd.f32 %v551_v53, %v515_v51  ;;  %v586_v57 = vadd.f32 %v585_v55, %v584_v54 }
  0xfd   :  { %v353_v58 = vadd.f32 %v586_v57, %v283_v56  ;;  %v492_v59 = vpop.f32.mrb[2].mxu1 }
  0xfe   :  { %v631_v60 = vpop.f32.mrb[3].mxu1 }
 0x117   :  { %v619_v61 = vpop.f32.mrb[2].mxu0 }
 0x118   :  { %v620_v62 = vpop.f32.mrb[3].mxu0 }
 0x119   :  { %v621_v63 = vadd.f32 %v620_v62, %v619_v61 }
 0x11b   :  { %v423_v0 = vadd.f32 %v621_v63, %v353_v58 }
 0x11d   :  { %v493_v1 = vadd.f32 %v492_v59, %v423_v0 }
 0x11f   :  { %v496_v2 = vmax.f32 %v493_v1, 0.0 }
 0x121   :  { %498 = vst.msk [vmem:[#allocation2] sm:$0xff] %vm497_vm2, %v496_v2 }
 0x122   :  { %503 = vsyncadd [#allocation3], 96  ;;  %s778_s1 = smov [#allocation2]  }
 0x123   :  { %s504_s2 = sshll.u32 %s778_s1, 4  ;;  %s505_s2 = int_to_ptr.vmem [resolvable:$true] %s504_s2 }
 0x124   :  { %s750_s8 = scalar_lea.vmem %s505_s2, 32  ;;  %s754_s9 = scalar_lea.vmem %s505_s2, 128 }
 0x125   :  { %p751_p0 = scmp.ne.s32.totalorder %s505_s2, %s750_s8  ;;  %p755_p1 = scmp.lt.s32.totalorder %s505_s2, %s505_s2 }
 0x126   :  { %p756_p2 = scmp.lt.s32.totalorder %s754_s9, %s750_s8 }
 0x128   :  { %p757_p3 = por %p756_p2, %p755_p1 }
 0x12a   :  { %p758_p4 = pnand %p757_p3, %p751_p0 }
 0x12c   :  { %761 = shalt.err (!%p758_p4)
}
 0x12d   :  { %s762_s12 = scalar_lea.hbm %s1147_s3, 32 }
 0x12e   :  { %p763_p5 = scmp.ne.s32.totalorder %s1147_s3, %s762_s12  ;;  %p766_p6 = scmp.lt.u32.totalorder %s762_s12, %s1147_s3 }
 0x130   :  { %p768_p7 = pnand %p766_p6, %p763_p5 }
 0x132   :  { %771 = shalt.err (!%p768_p7)
}
 0x133   :  { %s779_s17 = smov 32   ;;  %s780_s18 = smov 2  }
 0x134   :  { %510 = dma.vmem_to_hbm [thread:$0]  %s505_s2, 32, %s1147_s3, [#allocation3], %s779_s17, %s779_s17, %s780_s18  }
 0x135   :  { %772 = dma.done.wait [#allocation3], 128  }
 0x136   :  { %773 = vsyncadd [#allocation3], 4294967168 }
 0x137   :  { %514 = vsyncpa [#allocation3], 1 }

</bundles_post_ra>
